<compile_context>
chip_gen: v7x
topology: tpu7x:2x2x1
jax: 0.10.0
libtpu: 0.0.40
codegen_flags: <defaults>
</compile_context>

<pallas_src>
import functools
import math
import operator

import jax
import jax.numpy as jnp
from jax.experimental import pallas as pl
from jax.experimental.pallas import tpu as pltpu


_MAX_INPUTS_PER_CALL = 8            # group agents so tiles stay large
_SMALL_PROBLEM_BYTES = 256 * 1024   # below this a standalone kernel cannot win


def _make_sum_kernel(n):
    """Kernel body: out = q0 + q1 + ... + q(n-1) on the current row tile."""

    def kernel(*refs):
        q_refs = refs[:n]
        out_ref = refs[n]
        acc = q_refs[0][...]
        for r in q_refs[1:]:
            acc = acc + r[...]
        out_ref[...] = acc

    return kernel


def _vmem_budget_bytes():
    """Generation-aware (budget, scoped-limit) pair for the tile working set."""
    try:
        phys = pltpu.get_tpu_info().vmem_capacity_bytes
    except Exception:  # be robust if the query is unavailable
        phys = 64 * 1024 * 1024      # conservative: v7x per-TC VMEM
    # ~half of physical VMEM for the double-buffered working set:
    #   v5e/v6e (128 MiB) -> 64 MiB budget, v7x (64 MiB) -> 32 MiB budget.
    budget = min(phys // 2, 64 * 1024 * 1024)
    limit = min(phys - 8 * 1024 * 1024, budget + 8 * 1024 * 1024)
    return budget, max(limit, budget)


def _lane_dense_view(b, a):
    """Pick a 2-D (rows, width) view with a lane-aligned width if possible."""
    if a % 128 == 0:
        return b, a                  # already lane-dense
    total = b * a
    for w in (512, 256, 128):        # pad-free reshape of contiguous data
        if total % w == 0:
            return total // w, w
    return b, a                      # fallback: full-A blocks (masked stores)


def _grouped_sum(qs):
    """Sum <= _MAX_INPUTS_PER_CALL equally-shaped 2-D arrays in one kernel."""
    n = len(qs)
    if n == 1:
        return qs[0]

    b, a = qs[0].shape
    dtype = qs[0].dtype
    itemsize = jnp.dtype(dtype).itemsize

    rows, width = _lane_dense_view(b, a)
    reshaped = (rows, width) != (b, a)
    if reshaped:
        qs = [q.reshape(rows, width) for q in qs]

    # Sublane packing per dtype: 8 (f32), 16 (bf16/f16), 32 (int8/fp8).
    pack = 8 * max(1, 4 // itemsize)

    budget, vmem_limit = _vmem_budget_bytes()
    bytes_per_row = 2 * (n + 1) * width * itemsize   # double-buffered in + out
    max_tr = max(pack, budget // bytes_per_row)
    tr = (max_tr // pack) * pack
    if tr >= rows or rows <= pack:
        tr = rows                    # single full block (always a legal shape)
    # else: tr is a multiple of `pack`, width is the full last dim -> legal;
    # the cdiv grid below handles a ragged final tile (padded reads, masked
    # writes), so tiles never degrade to 8 rows for awkward row counts.

    grid = (pl.cdiv(rows, tr),)
    block = pl.BlockSpec((tr, width), lambda i: (i, 0))

    cost = pl.CostEstimate(
        flops=(n - 1) * rows * width,
        transcendentals=0,
        bytes_accessed=(n + 1) * rows * width * itemsize,
    )

    out = pl.pallas_call(
        _make_sum_kernel(n),
        out_shape=jax.ShapeDtypeStruct((rows, width), dtype),
        grid_spec=pl.GridSpec(
            grid=grid,
            in_specs=[block] * n,
            out_specs=block,
        ),
        compiler_params=pltpu.CompilerParams(
            dimension_semantics=("parallel",),   # row tiles are independent
            vmem_limit_bytes=vmem_limit,
        ),
        cost_estimate=cost,
    )(*qs)

    if reshaped:
        out = out.reshape(b, a)
    return out


def vdn_forward(q_values, *, force_kernel=False):
    """q_values: list of equally-shaped arrays -> their elementwise sum."""
    n = len(q_values)
    if n == 0:
        raise ValueError("q_values must be a non-empty list")

    shape = q_values[0].shape
    for q in q_values:
        if q.shape != shape:
            raise ValueError("all q_values must share the same shape")

    # Unify dtypes explicitly (avoid silent downcast through the out_ref).
    dtype = jnp.result_type(*q_values)
    q_values = [q if q.dtype == dtype else q.astype(dtype) for q in q_values]

    if n == 1:
        return q_values[0]

    itemsize = jnp.dtype(dtype).itemsize
    numel = math.prod(shape) if len(shape) > 0 else 1
    total_bytes = (n + 1) * numel * itemsize

    if total_bytes < _SMALL_PROBLEM_BYTES and not force_kernel:
        # Tiny problem: launch overhead dominates any standalone kernel.
        # TODO(synk): in a real agent stack, fuse this agent-sum into the
        # producing per-agent Q-network matmul epilogue instead.
        return functools.reduce(operator.add, q_values)

    # Work in 2-D (rows, last-dim); restore the original shape at the end.
    a = int(shape[-1]) if len(shape) >= 1 else 1
    b = numel // a
    qs = [q.reshape(b, a) for q in q_values]

    # Tree of grouped sums so per-call footprint (and DMA issue rate) stays
    # bounded for large agent counts while tiles stay large.
    while len(qs) > 1:
        qs = [
            _grouped_sum(qs[i:i + _MAX_INPUTS_PER_CALL])
            for i in range(0, len(qs), _MAX_INPUTS_PER_CALL)
        ]
    return qs[0].reshape(shape)


if __name__ == "__main__":
    key = jax.random.PRNGKey(0)

    # Case 1: kernel path with an odd action count (exercises the lane-dense
    # reshape: 1024*18 elements viewed as (36, 512)).
    N1, B1, A1 = 4, 1024, 18
    k1 = jax.random.split(key, N1)
    qs1 = [jax.random.normal(k, (B1, A1), dtype=jnp.float32) for k in k1]
    out1 = jax.block_until_ready(vdn_forward(qs1))
    ref1 = jnp.stack(qs1, axis=0).sum(axis=0)
    assert out1.shape == (B1, A1)
    assert jnp.allclose(out1, ref1, atol=1e-5, rtol=1e-5)

    # Case 2: kernel path with a lane-aligned last dim (no reshape needed).
    N2, B2, A2 = 4, 256, 128
    k2 = jax.random.split(jax.random.PRNGKey(1), N2)
    qs2 = [jax.random.normal(k, (B2, A2), dtype=jnp.float32) for k in k2]
    out2 = jax.block_until_ready(vdn_forward(qs2, force_kernel=True))
    ref2 = jnp.stack(qs2, axis=0).sum(axis=0)
    assert jnp.allclose(out2, ref2, atol=1e-5, rtol=1e-5)

    # Case 3: tiny problem -> fast path (plain fused adds, no custom call).
    N3, B3, A3 = 3, 8, 5
    k3 = jax.random.split(jax.random.PRNGKey(2), N3)
    qs3 = [jax.random.normal(k, (B3, A3), dtype=jnp.float32) for k in k3]
    out3 = jax.block_until_ready(vdn_forward(qs3))
    ref3 = jnp.stack(qs3, axis=0).sum(axis=0)
    assert jnp.allclose(out3, ref3, atol=1e-5, rtol=1e-5)

    print("KERNEL_OK")
</pallas_src>

<mosaic_0001>
module attributes {stable_mosaic.version = 11 : i64} {
  func.func @kernel(%arg0: i32, %arg1: memref<36x512xf32, #tpu.memory_space<vmem>>, %arg2: memref<36x512xf32, #tpu.memory_space<vmem>>, %arg3: memref<36x512xf32, #tpu.memory_space<vmem>>, %arg4: memref<36x512xf32, #tpu.memory_space<vmem>>, %arg5: memref<36x512xf32, #tpu.memory_space<vmem>>) attributes {dimension_semantics = [#tpu.dimension_semantics<parallel>], iteration_bounds = array<i64: 1>, scalar_prefetch = 0 : i64, scratch_operands = 0 : i64, tpu.core_type = #tpu.core_type<tc>, window_params = [{transform_indices = @transform_0, window_bounds = array<i64: 36, 512>}, {transform_indices = @transform_1, window_bounds = array<i64: 36, 512>}, {transform_indices = @transform_2, window_bounds = array<i64: 36, 512>}, {transform_indices = @transform_3, window_bounds = array<i64: 36, 512>}, {transform_indices = @transform_4, window_bounds = array<i64: 36, 512>}]} {
    %c0 = arith.constant 0 : index
    %c0_0 = arith.constant 0 : index
    %0 = vector.load %arg1[%c0, %c0_0] : memref<36x512xf32, #tpu.memory_space<vmem>>, vector<36x512xf32>
    %c0_1 = arith.constant 0 : index
    %c0_2 = arith.constant 0 : index
    %1 = vector.load %arg2[%c0_1, %c0_2] : memref<36x512xf32, #tpu.memory_space<vmem>>, vector<36x512xf32>
    %2 = arith.addf %0, %1 : vector<36x512xf32>
    %c0_3 = arith.constant 0 : index
    %c0_4 = arith.constant 0 : index
    %3 = vector.load %arg3[%c0_3, %c0_4] : memref<36x512xf32, #tpu.memory_space<vmem>>, vector<36x512xf32>
    %4 = arith.addf %2, %3 : vector<36x512xf32>
    %c0_5 = arith.constant 0 : index
    %c0_6 = arith.constant 0 : index
    %5 = vector.load %arg4[%c0_5, %c0_6] : memref<36x512xf32, #tpu.memory_space<vmem>>, vector<36x512xf32>
    %6 = arith.addf %4, %5 : vector<36x512xf32>
    %c0_7 = arith.constant 0 : index
    %c0_8 = arith.constant 0 : index
    %7 = vector.load %arg5[%c0_7, %c0_8] : memref<36x512xf32, #tpu.memory_space<vmem>>, vector<36x512xf32>
    tpu.vector_store %arg5[%c0_7, %c0_8], %6 {strides = array<i32>} : memref<36x512xf32, #tpu.memory_space<vmem>>, vector<36x512xf32>,
    return
  }
  func.func @transform_0(%arg0: i32) -> (i32, i32) {
    %c0_i32 = arith.constant 0 : i32
    %c0_i32_0 = arith.constant 0 : i32
    return %arg0, %c0_i32 : i32, i32
  }
  func.func @transform_1(%arg0: i32) -> (i32, i32) {
    %c0_i32 = arith.constant 0 : i32
    %c0_i32_0 = arith.constant 0 : i32
    return %arg0, %c0_i32 : i32, i32
  }
  func.func @transform_2(%arg0: i32) -> (i32, i32) {
    %c0_i32 = arith.constant 0 : i32
    %c0_i32_0 = arith.constant 0 : i32
    return %arg0, %c0_i32 : i32, i32
  }
  func.func @transform_3(%arg0: i32) -> (i32, i32) {
    %c0_i32 = arith.constant 0 : i32
    %c0_i32_0 = arith.constant 0 : i32
    return %arg0, %c0_i32 : i32, i32
  }
  func.func @transform_4(%arg0: i32) -> (i32, i32) {
    %c0_i32 = arith.constant 0 : i32
    %c0_i32_0 = arith.constant 0 : i32
    return %arg0, %c0_i32 : i32, i32
  }
}

</mosaic_0001>

<bundles_post_ra>
// kernel: tpu_custom_call.1
= control target key start
LH: loop header
LB: loop body
LE: loop exit
PB: predicated region body
PF: predicated region fallthrough
CT: control target
= control target key end

     0   :  { %9 = vsyncpa [#allocation3], 0  ;;  %s498_s0 = inlined_call_operand.hbm [shape: f32[36,512], index: 0, kind: input, shape index: {}]   ;;  %s499_s1 = inlined_call_operand.hbm [shape: f32[36,512], index: 1, kind: input, shape index: {}]   ;;  %s500_s2 = inlined_call_operand.hbm [shape: f32[36,512], index: 2, kind: input, shape index: {}]   ;;  %s501_s3 = inlined_call_operand.hbm [shape: f32[36,512], index: 3, kind: input, shape index: {}]   ;;  %s502_s4 = inlined_call_operand.hbm [shape: f32[36,512], index: 4, kind: output, shape index: {}]  }
   0x1   :  { %10 = vsyncpa [#allocation6], 0 }
   0x2   :  { %11 = vsyncpa [#allocation9], 0 }
   0x3   :  { %12 = vsyncpa [#allocation4], 0  ;;  %s377_s15 = smov [#allocation5]   ;;  %s378_s17 = smov [#allocation2]  }
   0x4   :  { %s30_s16 = sshll.u32 %s377_s15, 4  ;;  %s18_s18 = sshll.u32 %s378_s17, 4  ;;  %s31_s16 = int_to_ptr.vmem [resolvable:$true] %s30_s16  ;;  %s409_s18 = int_to_ptr.vmem [resolvable:$true] %s18_s18 }
   0x5   :  { %s259_s21 = scalar_lea.hbm %s499_s1, 2560 }
   0x6   :  { %p260_p0 = scmp.ne.s32.totalorder %s499_s1, %s259_s21  ;;  %p263_p1 = scmp.lt.u32.totalorder %s259_s21, %s499_s1 }
   0x8   :  { %p265_p2 = pnand %p263_p1, %p260_p0 }
   0xa   :  { %268 = shalt.err (!%p265_p2)
}
   0xb   :  { %s269_s26 = scalar_lea.vmem %s31_s16, 2560  ;;  %p274_p4 = scmp.lt.s32.totalorder %s31_s16, %s31_s16 }
   0xc   :  { %p270_p3 = scmp.ne.s32.totalorder %s31_s16, %s269_s26  ;;  %p275_p5 = scmp.lt.s32.totalorder %s269_s26, %s269_s26 }
   0xe   :  { %p276_p6 = por %p275_p5, %p274_p4 }
  0x10   :  { %p277_p7 = pnand %p276_p6, %p270_p3 }
  0x12   :  { %280 = shalt.err (!%p277_p7)
}
  0x13   :  { %s379_s27 = smov 512   ;;  %s380_s28 = smov 32  }
  0x14   :  { %36 = dma.hbm_to_vmem [thread:$0]  %s499_s1, 2560, %s31_s16, [#allocation6], %s379_s27, %s379_s27, %s380_s28  }
  0x15   :  { %s281_s7 = scalar_lea.hbm %s498_s0, 2560 }
  0x16   :  { %p282_p8 = scmp.ne.s32.totalorder %s498_s0, %s281_s7  ;;  %p285_p9 = scmp.lt.u32.totalorder %s281_s7, %s498_s0 }
  0x18   :  { %p287_p10 = pnand %p285_p9, %p282_p8 }
  0x1a   :  { %290 = shalt.err (!%p287_p10)
}
  0x1b   :  { %s291_s12 = scalar_lea.vmem %s409_s18, 2560  ;;  %p296_p12 = scmp.lt.s32.totalorder %s409_s18, %s409_s18 }
  0x1c   :  { %p292_p11 = scmp.ne.s32.totalorder %s409_s18, %s291_s12  ;;  %p297_p13 = scmp.lt.s32.totalorder %s291_s12, %s291_s12 }
  0x1e   :  { %p298_p0 = por %p297_p13, %p296_p12 }
  0x20   :  { %p299_p1 = pnand %p298_p0, %p292_p11 }
  0x22   :  { %302 = shalt.err (!%p299_p1)
}
  0x23   :  { %24 = dma.hbm_to_vmem [thread:$0]  %s498_s0, 2560, %s409_s18, [#allocation3], %s379_s27, %s379_s27, %s380_s28  }
  0x24   :  { %s381_s14 = smov [#allocation7]   ;;  %s382_s16 = smov [#allocation8]  }
  0x25   :  { %s42_s15 = sshll.u32 %s381_s14, 4  ;;  %s54_s17 = sshll.u32 %s382_s16, 4  ;;  %s43_s15 = int_to_ptr.vmem [resolvable:$true] %s42_s15  ;;  %s446_s17 = int_to_ptr.vmem [resolvable:$true] %s54_s17 }
  0x26   :  { %s303_s21 = scalar_lea.hbm %s500_s2, 2560 }
  0x27   :  { %p304_p2 = scmp.ne.s32.totalorder %s500_s2, %s303_s21  ;;  %p307_p3 = scmp.lt.u32.totalorder %s303_s21, %s500_s2 }
  0x29   :  { %p309_p4 = pnand %p307_p3, %p304_p2 }
  0x2b   :  { %312 = shalt.err (!%p309_p4)
}
  0x2c   :  { %s313_s0 = scalar_lea.vmem %s43_s15, 2560  ;;  %p318_p6 = scmp.lt.s32.totalorder %s43_s15, %s43_s15 }
  0x2d   :  { %p314_p5 = scmp.ne.s32.totalorder %s43_s15, %s313_s0  ;;  %p319_p7 = scmp.lt.s32.totalorder %s313_s0, %s313_s0 }
  0x2f   :  { %p320_p8 = por %p319_p7, %p318_p6 }
  0x31   :  { %p321_p9 = pnand %p320_p8, %p314_p5 }
  0x33   :  { %324 = shalt.err (!%p321_p9)
}
  0x34   :  { %48 = dma.hbm_to_vmem [thread:$0]  %s500_s2, 2560, %s43_s15, [#allocation6], %s379_s27, %s379_s27, %s380_s28  }
  0x35   :  { %s325_s5 = scalar_lea.hbm %s501_s3, 2560 }
  0x36   :  { %p326_p10 = scmp.ne.s32.totalorder %s501_s3, %s325_s5  ;;  %p329_p11 = scmp.lt.u32.totalorder %s325_s5, %s501_s3 }
  0x38   :  { %p331_p12 = pnand %p329_p11, %p326_p10 }
  0x3a   :  { %334 = shalt.err (!%p331_p12)
}
  0x3b   :  { %s335_s10 = scalar_lea.vmem %s446_s17, 2560  ;;  %p340_p0 = scmp.lt.s32.totalorder %s446_s17, %s446_s17 }
  0x3c   :  { %p336_p13 = scmp.ne.s32.totalorder %s446_s17, %s335_s10  ;;  %p341_p1 = scmp.lt.s32.totalorder %s335_s10, %s335_s10 }
  0x3e   :  { %p342_p2 = por %p341_p1, %p340_p0 }
  0x40   :  { %p343_p3 = pnand %p342_p2, %p336_p13 }
  0x42   :  { %346 = shalt.err (!%p343_p3)
}
  0x43   :  { %60 = dma.hbm_to_vmem [thread:$0]  %s501_s3, 2560, %s446_s17, [#allocation9], %s379_s27, %s379_s27, %s380_s28  }
  0x44   :  { %369 = dma.done.wait [#allocation3], 2560  }
  0x45   :  { %370 = vsyncadd [#allocation3], 4294964736 }
  0x46   :  { %371 = dma.done.wait [#allocation6], 5120  }
  0x47   :  { %372 = vsyncadd [#allocation6], 4294962176 }
  0x48   :  { %373 = dma.done.wait [#allocation9], 2560  }
  0x49   :  { %374 = vsyncadd [#allocation9], 4294964736  ;;  %v73_v0 = vld [vmem:[#allocation2] sm:$0xff]  ;;  %v74_v4 = vld [vmem:[#allocation2 + $0x8] sm:$0xff]  ;;  %s383_s3 = smov [#allocation10]  }
  0x4a   :  { %v93_v1 = vld [vmem:[#allocation5] sm:$0xff]  ;;  %v94_v5 = vld [vmem:[#allocation5 + $0x8] sm:$0xff]  ;;  %v75_v9 = vld [vmem:[#allocation2 + $0x10] sm:$0xff]  ;;  %s238_s12 = sshll.u32 %s383_s3, 4  ;;  %s239_s12 = int_to_ptr.vmem [resolvable:$true] %s238_s12 }
  0x4b   :  { %v133_v2 = vld [vmem:[#allocation7] sm:$0xff]  ;;  %v113_v3 = vadd.f32 %v93_v1, %v73_v0  ;;  %v114_v7 = vadd.f32 %v94_v5, %v74_v4  ;;  %v134_v8 = vld [vmem:[#allocation7 + $0x8] sm:$0xff]  ;;  %v95_v12 = vld [vmem:[#allocation5 + $0x10] sm:$0xff]  ;;  %s347_s1 = scalar_lea.vmem %s239_s12, 2560  ;;  %p352_p5 = scmp.lt.s32.totalorder %s239_s12, %s239_s12 }
  0x4c   :  { %v173_v6 = vld [vmem:[#allocation8] sm:$0xff]  ;;  %v174_v11 = vld [vmem:[#allocation8 + $0x8] sm:$0xff]  ;;  %v135_v13 = vld [vmem:[#allocation7 + $0x10] sm:$0xff]  ;;  %v115_v15 = vadd.f32 %v95_v12, %v75_v9  ;;  %p348_p4 = scmp.ne.s32.totalorder %s239_s12, %s347_s1  ;;  %p353_p6 = scmp.lt.s32.totalorder %s347_s1, %s347_s1 }
  0x4d   :  { %v153_v10 = vadd.f32 %v133_v2, %v113_v3  ;;  %v154_v14 = vadd.f32 %v134_v8, %v114_v7  ;;  %v76_v16 = vld [vmem:[#allocation2 + $0x18] sm:$0xff]  ;;  %v175_v20 = vld [vmem:[#allocation8 + $0x10] sm:$0xff]  ;;  %v77_v22 = vld [vmem:[#allocation2 + $0x20] sm:$0xff] }
  0x4e   :  { %v96_v17 = vld [vmem:[#allocation5 + $0x18] sm:$0xff]  ;;  %v97_v23 = vld [vmem:[#allocation5 + $0x20] sm:$0xff]  ;;  %v155_v25 = vadd.f32 %v135_v13, %v115_v15  ;;  %v78_v29 = vld [vmem:[#allocation2 + $0x28] sm:$0xff]  ;;  %p354_p7 = por %p353_p6, %p352_p5 }
  0x4f   :  { %v136_v18 = vld [vmem:[#allocation7 + $0x18] sm:$0xff]  ;;  %v193_v19 = vadd.f32 %v173_v6, %v153_v10  ;;  %v116_v21 = vadd.f32 %v96_v17, %v76_v16  ;;  %v194_v24 = vadd.f32 %v174_v11, %v154_v14  ;;  %v117_v27 = vadd.f32 %v97_v23, %v77_v22  ;;  %v137_v28 = vld [vmem:[#allocation7 + $0x20] sm:$0xff]  ;;  %v98_v32 = vld [vmem:[#allocation5 + $0x28] sm:$0xff] }
  0x50   :  { %v176_v26 = vld [vmem:[#allocation8 + $0x18] sm:$0xff]  ;;  %v177_v31 = vld [vmem:[#allocation8 + $0x20] sm:$0xff]  ;;  %v138_v33 = vld [vmem:[#allocation7 + $0x28] sm:$0xff]  ;;  %v195_v34 = vadd.f32 %v175_v20, %v155_v25  ;;  %v118_v36 = vadd.f32 %v98_v32, %v78_v29  ;;  %p355_p8 = pnand %p354_p7, %p348_p4 }
  0x51   :  { %213 = vst [vmem:[#allocation10] sm:$0xff] %v193_v19  ;;  %v156_v30 = vadd.f32 %v136_v18, %v116_v21  ;;  %214 = vst [vmem:[#allocation10 + $0x8] sm:$0xff] %v194_v24  ;;  %v157_v35 = vadd.f32 %v137_v28, %v117_v27  ;;  %v79_v37 = vld [vmem:[#allocation2 + $0x30] sm:$0xff]  ;;  %v178_v41 = vld [vmem:[#allocation8 + $0x28] sm:$0xff] }
  0x52   :  { %v99_v38 = vld [vmem:[#allocation5 + $0x30] sm:$0xff]  ;;  %v80_v43 = vld [vmem:[#allocation2 + $0x38] sm:$0xff]  ;;  %215 = vst [vmem:[#allocation10 + $0x10] sm:$0xff] %v195_v34  ;;  %v158_v46 = vadd.f32 %v138_v33, %v118_v36  ;;  %v81_v50 = vld [vmem:[#allocation2 + $0x40] sm:$0xff] }
  0x53   :  { %v139_v39 = vld [vmem:[#allocation7 + $0x30] sm:$0xff]  ;;  %v196_v40 = vadd.f32 %v176_v26, %v156_v30  ;;  %v119_v42 = vadd.f32 %v99_v38, %v79_v37  ;;  %v100_v44 = vld [vmem:[#allocation5 + $0x38] sm:$0xff]  ;;  %v197_v45 = vadd.f32 %v177_v31, %v157_v35  ;;  %v101_v53 = vld [vmem:[#allocation5 + $0x40] sm:$0xff] }
  0x54   :  { %v179_v47 = vld [vmem:[#allocation8 + $0x30] sm:$0xff]  ;;  %v120_v48 = vadd.f32 %v100_v44, %v80_v43  ;;  %v140_v49 = vld [vmem:[#allocation7 + $0x38] sm:$0xff]  ;;  %v141_v54 = vld [vmem:[#allocation7 + $0x40] sm:$0xff]  ;;  %v198_v55 = vadd.f32 %v178_v41, %v158_v46  ;;  %v121_v57 = vadd.f32 %v101_v53, %v81_v50 }
  0x55   :  { %216 = vst [vmem:[#allocation10 + $0x18] sm:$0xff] %v196_v40  ;;  %v159_v51 = vadd.f32 %v139_v39, %v119_v42  ;;  %v180_v52 = vld [vmem:[#allocation8 + $0x38] sm:$0xff]  ;;  %217 = vst [vmem:[#allocation10 + $0x20] sm:$0xff] %v197_v45  ;;  %v82_v58 = vld [vmem:[#allocation2 + $0x48] sm:$0xff] }
  0x56   :  { %v160_v56 = vadd.f32 %v140_v49, %v120_v48  ;;  %v102_v59 = vld [vmem:[#allocation5 + $0x48] sm:$0xff]  ;;  %v181_v62 = vld [vmem:[#allocation8 + $0x40] sm:$0xff]  ;;  %v83_v0 = vld [vmem:[#allocation2 + $0x50] sm:$0xff]  ;;  %218 = vst [vmem:[#allocation10 + $0x28] sm:$0xff] %v198_v55  ;;  %v161_v3 = vadd.f32 %v141_v54, %v121_v57 }
  0x57   :  { %v142_v60 = vld [vmem:[#allocation7 + $0x48] sm:$0xff]  ;;  %v199_v61 = vadd.f32 %v179_v47, %v159_v51  ;;  %v122_v63 = vadd.f32 %v102_v59, %v82_v58  ;;  %v103_v1 = vld [vmem:[#allocation5 + $0x50] sm:$0xff]  ;;  %v84_v7 = vld [vmem:[#allocation2 + $0x58] sm:$0xff] }
  0x58   :  { %v200_v2 = vadd.f32 %v180_v52, %v160_v56  ;;  %v182_v4 = vld [vmem:[#allocation8 + $0x48] sm:$0xff]  ;;  %v123_v5 = vadd.f32 %v103_v1, %v83_v0  ;;  %v143_v6 = vld [vmem:[#allocation7 + $0x50] sm:$0xff]  ;;  %v104_v10 = vld [vmem:[#allocation5 + $0x58] sm:$0xff]  ;;  %v201_v12 = vadd.f32 %v181_v62, %v161_v3 }
  0x59   :  { %219 = vst [vmem:[#allocation10 + $0x30] sm:$0xff] %v199_v61  ;;  %v162_v8 = vadd.f32 %v142_v60, %v122_v63  ;;  %v183_v9 = vld [vmem:[#allocation8 + $0x50] sm:$0xff]  ;;  %v144_v11 = vld [vmem:[#allocation7 + $0x58] sm:$0xff]  ;;  %v124_v14 = vadd.f32 %v104_v10, %v84_v7  ;;  %v85_v15 = vld [vmem:[#allocation2 + $0x60] sm:$0xff] }
  0x5a   :  { %220 = vst [vmem:[#allocation10 + $0x38] sm:$0xff] %v200_v2  ;;  %v163_v13 = vadd.f32 %v143_v6, %v123_v5  ;;  %v105_v16 = vld [vmem:[#allocation5 + $0x60] sm:$0xff]  ;;  %v184_v19 = vld [vmem:[#allocation8 + $0x58] sm:$0xff]  ;;  %v86_v21 = vld [vmem:[#allocation2 + $0x68] sm:$0xff] }
  0x5b   :  { %v145_v17 = vld [vmem:[#allocation7 + $0x60] sm:$0xff]  ;;  %v202_v18 = vadd.f32 %v182_v4, %v162_v8  ;;  %v125_v20 = vadd.f32 %v105_v16, %v85_v15  ;;  %v106_v22 = vld [vmem:[#allocation5 + $0x68] sm:$0xff]  ;;  %221 = vst [vmem:[#allocation10 + $0x40] sm:$0xff] %v201_v12  ;;  %v164_v24 = vadd.f32 %v144_v11, %v124_v14  ;;  %v87_v28 = vld [vmem:[#allocation2 + $0x70] sm:$0xff] }
  0x5c   :  { %v203_v23 = vadd.f32 %v183_v9, %v163_v13  ;;  %v185_v25 = vld [vmem:[#allocation8 + $0x60] sm:$0xff]  ;;  %v126_v26 = vadd.f32 %v106_v22, %v86_v21  ;;  %v146_v27 = vld [vmem:[#allocation7 + $0x68] sm:$0xff]  ;;  %v107_v31 = vld [vmem:[#allocation5 + $0x70] sm:$0xff] }
  0x5d   :  { %222 = vst [vmem:[#allocation10 + $0x48] sm:$0xff] %v202_v18  ;;  %v165_v29 = vadd.f32 %v145_v17, %v125_v20  ;;  %v186_v30 = vld [vmem:[#allocation8 + $0x68] sm:$0xff]  ;;  %v147_v32 = vld [vmem:[#allocation7 + $0x70] sm:$0xff]  ;;  %v204_v33 = vadd.f32 %v184_v19, %v164_v24  ;;  %v127_v35 = vadd.f32 %v107_v31, %v87_v28  ;;  %v88_v36 = vld [vmem:[#allocation2 + $0x78] sm:$0xff] }
  0x5e   :  { %223 = vst [vmem:[#allocation10 + $0x50] sm:$0xff] %v203_v23  ;;  %v166_v34 = vadd.f32 %v146_v27, %v126_v26  ;;  %v108_v37 = vld [vmem:[#allocation5 + $0x78] sm:$0xff]  ;;  %v187_v40 = vld [vmem:[#allocation8 + $0x70] sm:$0xff]  ;;  %v89_v42 = vld [vmem:[#allocation2 + $0x80] sm:$0xf] }
  0x5f   :  { %v148_v38 = vld [vmem:[#allocation7 + $0x78] sm:$0xff]  ;;  %v205_v39 = vadd.f32 %v185_v25, %v165_v29  ;;  %v128_v41 = vadd.f32 %v108_v37, %v88_v36  ;;  %v109_v43 = vld [vmem:[#allocation5 + $0x80] sm:$0xf]  ;;  %224 = vst [vmem:[#allocation10 + $0x58] sm:$0xff] %v204_v33  ;;  %v167_v45 = vadd.f32 %v147_v32, %v127_v35  ;;  %v90_v49 = vld [vmem:[#allocation2 + $0x88] sm:$0xf] }
  0x60   :  { %v206_v44 = vadd.f32 %v186_v30, %v166_v34  ;;  %v188_v46 = vld [vmem:[#allocation8 + $0x78] sm:$0xff]  ;;  %v129_v47 = vadd.f32 %v109_v43, %v89_v42  ;;  %v149_v48 = vld [vmem:[#allocation7 + $0x80] sm:$0xf]  ;;  %v110_v52 = vld [vmem:[#allocation5 + $0x88] sm:$0xf] }
  0x61   :  { %225 = vst [vmem:[#allocation10 + $0x60] sm:$0xff] %v205_v39  ;;  %v168_v50 = vadd.f32 %v148_v38, %v128_v41  ;;  %v189_v51 = vld [vmem:[#allocation8 + $0x80] sm:$0xf]  ;;  %v150_v53 = vld [vmem:[#allocation7 + $0x88] sm:$0xf]  ;;  %v207_v54 = vadd.f32 %v187_v40, %v167_v45  ;;  %v130_v56 = vadd.f32 %v110_v52, %v90_v49 }
  0x62   :  { %226 = vst [vmem:[#allocation10 + $0x68] sm:$0xff] %v206_v44  ;;  %v169_v55 = vadd.f32 %v149_v48, %v129_v47  ;;  %v91_v57 = vld [vmem:[#allocation2 + $0x90] sm:$0xf]  ;;  %v190_v61 = vld [vmem:[#allocation8 + $0x88] sm:$0xf] }
  0x63   :  { %v111_v58 = vld [vmem:[#allocation5 + $0x90] sm:$0xf]  ;;  %v208_v60 = vadd.f32 %v188_v46, %v168_v50  ;;  %v92_v63 = vld [vmem:[#allocation2 + $0x98] sm:$0xf]  ;;  %227 = vst [vmem:[#allocation10 + $0x70] sm:$0xff] %v207_v54  ;;  %v170_v2 = vadd.f32 %v150_v53, %v130_v56 }
  0x64   :  { %v151_v59 = vld [vmem:[#allocation7 + $0x90] sm:$0xf]  ;;  %v131_v62 = vadd.f32 %v111_v58, %v91_v57  ;;  %v112_v0 = vld [vmem:[#allocation5 + $0x98] sm:$0xf]  ;;  %v209_v1 = vadd.f32 %v189_v51, %v169_v55 }
  0x65   :  { %v191_v3 = vld [vmem:[#allocation8 + $0x90] sm:$0xf]  ;;  %v132_v4 = vadd.f32 %v112_v0, %v92_v63  ;;  %v152_v5 = vld [vmem:[#allocation7 + $0x98] sm:$0xf]  ;;  %228 = vst [vmem:[#allocation10 + $0x78] sm:$0xff] %v208_v60  ;;  %v210_v8 = vadd.f32 %v190_v61, %v170_v2 }
  0x66   :  { %v171_v6 = vadd.f32 %v151_v59, %v131_v62  ;;  %v192_v7 = vld [vmem:[#allocation8 + $0x98] sm:$0xf]  ;;  %229 = vst [vmem:[#allocation10 + $0x80] sm:$0xf] %v209_v1 }
  0x67   :  { %v172_v9 = vadd.f32 %v152_v5, %v132_v4  ;;  %230 = vst [vmem:[#allocation10 + $0x88] sm:$0xf] %v210_v8 }
  0x68   :  { %v211_v10 = vadd.f32 %v191_v3, %v171_v6 }
  0x69   :  { %v212_v11 = vadd.f32 %v192_v7, %v172_v9 }
  0x6a   :  { %231 = vst [vmem:[#allocation10 + $0x90] sm:$0xf] %v211_v10 }
  0x6b   :  { %232 = vst [vmem:[#allocation10 + $0x98] sm:$0xf] %v212_v11 }
  0x6c   :  { %358 = shalt.err (!%p355_p8)
}
  0x6d   :  { %s359_s15 = scalar_lea.hbm %s502_s4, 2560 }
  0x6e   :  { %p360_p9 = scmp.ne.s32.totalorder %s502_s4, %s359_s15  ;;  %p363_p10 = scmp.lt.u32.totalorder %s359_s15, %s502_s4 }
  0x70   :  { %p365_p11 = pnand %p363_p10, %p360_p9 }
  0x72   :  { %368 = shalt.err (!%p365_p11)
}
  0x73   :  { %244 = dma.vmem_to_hbm [thread:$0]  %s239_s12, 2560, %s502_s4, [#allocation4], %s379_s27, %s379_s27, %s380_s28  }
  0x74   :  { %375 = dma.done.wait [#allocation4], 2560  }
  0x75   :  { %376 = vsyncadd [#allocation4], 4294964736 }
  0x76   :  { %248 = vsyncpa [#allocation3], 1 }
  0x77   :  { %249 = vsyncpa [#allocation6], 1 }
  0x78   :  { %250 = vsyncpa [#allocation9], 1 }
  0x79   :  { %251 = vsyncpa [#allocation4], 1 }

</bundles_post_ra>
